<compile_context>
chip_gen: v7x
topology: tpu7x:2x2x1
jax: 0.10.0
libtpu: 0.0.40
codegen_flags: <defaults>
</compile_context>

<pallas_src>
import functools

import jax
import jax.numpy as jnp
from jax.experimental import pallas as pl
from jax.experimental.pallas import tpu as pltpu


def _round_up(x, m):
    return ((x + m - 1) // m) * m


def _num_tensorcores_per_chip():
    """Best-effort TensorCore count (2 on v7x) so the parallel batch axis gets
    at least that many grid tiles.  Falls back to 1 (v5e / v6e behaviour)."""
    try:
        info = pltpu.get_tpu_info()
        for attr in ("num_tensorcores", "tensorcores_per_chip",
                     "num_cores_per_chip", "num_cores", "core_count"):
            v = getattr(info, attr, None)
            if isinstance(v, int) and v > 0:
                return v
    except Exception:
        pass
    try:
        v = getattr(jax.devices()[0], "num_cores", None)
        if isinstance(v, int) and v > 0:
            return v
    except Exception:
        pass
    return 1


# ----------------------------- Pallas kernel --------------------------------
def lmf_kernel(feat_ref, w_ref, sel_ref, bias_ref, out_ref,
               *, slot, output_dim, use_softmax):
    # Single block-diagonal matmul for all three modalities (bf16 operands on
    # the MXU, f32 accumulation).  The trailing constant-1 feature lane picks
    # up every modality's bias row, so no separate bias adds are needed.
    f = jnp.dot(feat_ref[...], w_ref[...], preferred_element_type=jnp.float32)

    # 128-aligned lane slices (slot is a multiple of 128) -> no lane shifts.
    fi = f[:, 0 * slot:1 * slot]
    fe = f[:, 1 * slot:2 * slot]
    fu = f[:, 2 * slot:3 * slot]

    p = fi * fe * fu                       # f32 on the VPU; padded lanes are 0

    # Rank reduction on the MXU: block-identity selector sums over rank and
    # pads the output to a lane-dense width in one shot.
    out = jnp.dot(p, sel_ref[...],
                  preferred_element_type=jnp.float32) + bias_ref[...]

    if use_softmax:
        col = jax.lax.broadcasted_iota(jnp.int32, out.shape, 1)
        valid = col < output_dim
        masked = jnp.where(valid, out, -1e30)          # exclude padded lanes
        m = jnp.max(masked, axis=-1, keepdims=True)
        e = jnp.where(valid, jnp.exp(masked - m), 0.0)
        out = e / jnp.sum(e, axis=-1, keepdims=True)   # exact divide (EUP slack)

    out_ref[...] = out.astype(out_ref.dtype)


# ------------------------------ host wrapper ---------------------------------
def lmf_forward(features, params, input_dims, output_dim, rank,
                use_softmax=False, compute_dtype=jnp.bfloat16,
                out_dtype=jnp.bfloat16, max_batch_tile=1024):
    img_in, ev_in, imu_in = input_dims
    total_in = img_in + ev_in + imu_in
    B = features.shape[0]
    RO = rank * output_dim
    SLOT = _round_up(RO, 128)                 # per-modality lane slot (aligned)
    O_pad = _round_up(output_dim, 128)        # lane-dense output slab

    # ---- host-side one-time parameter folding (exact) ----------------------
    w = params["fusion_weights"][0].astype(jnp.float32)            # (rank,)
    factors = [
        (params["img_factor"].astype(jnp.float32) * w[:, None, None], img_in, 0),
        (params["ev_factor"].astype(jnp.float32), ev_in, img_in),
        (params["imu_factor"].astype(jnp.float32), imu_in, img_in + ev_in),
    ]

    # Block-diagonal weight: rows = feature lanes + one trailing constant-1
    # lane that carries every modality's (row-0) bias.
    W = jnp.zeros((total_in + 1, 3 * SLOT), jnp.float32)
    for m, (f, d, r0) in enumerate(factors):
        f2 = jnp.transpose(f, (1, 0, 2)).reshape(d + 1, RO)   # row 0 = bias row
        c0 = m * SLOT
        W = W.at[r0:r0 + d, c0:c0 + RO].set(f2[1:])
        W = W.at[total_in, c0:c0 + RO].set(f2[0])

    # Rank-sum selector (SLOT, O_pad): sel[r*O + o, o] = 1.
    sel = jnp.tile(jnp.eye(output_dim, dtype=jnp.float32), (rank, 1))   # (RO, O)
    sel = jnp.pad(sel, ((0, SLOT - RO), (0, O_pad - output_dim)))
    bias = jnp.pad(params["fusion_bias"].astype(jnp.float32),
                   ((0, 0), (0, O_pad - output_dim)))

    # Features: append the constant-1 lane, then pad the batch.
    feat_aug = jnp.concatenate(
        [features.astype(jnp.float32), jnp.ones((B, 1), jnp.float32)], axis=1)

    # ---- batch tiling: big tiles, and >= num_TC tiles for megacore (v7x) ----
    ALIGN = 16                                  # bf16 sublane packing
    n_tc = max(_num_tensorcores_per_chip(), 1)
    TB = min(max_batch_tile, _round_up(max(-(-B // n_tc), 1), ALIGN))
    B_pad = _round_up(B, TB)
    if B_pad != B:
        feat_aug = jnp.pad(feat_aug, ((0, B_pad - B), (0, 0)))

    feat_aug = feat_aug.astype(compute_dtype)   # bf16 MXU operands
    W = W.astype(compute_dtype)

    kernel = functools.partial(lmf_kernel, slot=SLOT, output_dim=output_dim,
                               use_softmax=use_softmax)
    const = lambda i: (0, 0)                    # constants stay VMEM-resident
    out = pl.pallas_call(
        kernel,
        out_shape=jax.ShapeDtypeStruct((B_pad, O_pad), out_dtype),
        grid=(B_pad // TB,),
        in_specs=[
            pl.BlockSpec((TB, total_in + 1), lambda i: (i, 0)),
            pl.BlockSpec((total_in + 1, 3 * SLOT), const),
            pl.BlockSpec((SLOT, O_pad), const),
            pl.BlockSpec((1, O_pad), const),
        ],
        out_specs=pl.BlockSpec((TB, O_pad), lambda i: (i, 0)),
        compiler_params=pltpu.CompilerParams(
            dimension_semantics=("parallel",)),
    )(feat_aug, W, sel, bias)

    return out[:B, :output_dim].astype(jnp.float32)


# --------------------------- pure-JAX reference -------------------------------
def lmf_reference(features, params, input_dims, output_dim, rank, use_softmax=False):
    img_in, ev_in, imu_in = input_dims
    B = features.shape[0]
    ones = jnp.ones((B, 1), jnp.float32)
    img_h = jnp.concatenate([ones, features[:, :img_in]], axis=1)
    ev_h = jnp.concatenate([ones, features[:, img_in:img_in + ev_in]], axis=1)
    imu_h = jnp.concatenate([ones, features[:, img_in + ev_in:]], axis=1)

    fusion_img = jnp.einsum("bi,rio->rbo", img_h, params["img_factor"])
    fusion_ev = jnp.einsum("bi,rio->rbo", ev_h, params["ev_factor"])
    fusion_imu = jnp.einsum("bi,rio->rbo", imu_h, params["imu_factor"])
    zy = fusion_img * fusion_ev * fusion_imu
    out = jnp.einsum("r,rbo->bo", params["fusion_weights"][0], zy) + params["fusion_bias"]
    if use_softmax:
        out = jax.nn.softmax(out, axis=-1)
    return out


# ----------------------------- parameter init ---------------------------------
def xavier_normal(key, shape):
    # Matches torch.nn.init.xavier_normal_ fan computation.
    if len(shape) == 2:
        fan_in, fan_out = shape[1], shape[0]
    else:
        receptive = 1
        for s in shape[2:]:
            receptive *= s
        fan_in = shape[1] * receptive
        fan_out = shape[0] * receptive
    std = (2.0 / (fan_in + fan_out)) ** 0.5
    return std * jax.random.normal(key, shape, dtype=jnp.float32)


def init_lmf_params(key, input_dims, output_dim, rank):
    img_in, ev_in, imu_in = input_dims
    k1, k2, k3, k4 = jax.random.split(key, 4)
    return {
        "img_factor": xavier_normal(k1, (rank, img_in + 1, output_dim)),
        "ev_factor": xavier_normal(k2, (rank, ev_in + 1, output_dim)),
        "imu_factor": xavier_normal(k3, (rank, imu_in + 1, output_dim)),
        "fusion_weights": xavier_normal(k4, (1, rank)),
        "fusion_bias": jnp.zeros((1, output_dim), jnp.float32),
    }


# ---------------------------------- main ---------------------------------------
if __name__ == "__main__":
    input_dims = (16, 12, 8)      # (img_in, ev_in, imu_in)
    output_dim = 8
    rank = 4
    batch = 4

    key = jax.random.PRNGKey(0)
    k_params, k_feat, k_big = jax.random.split(key, 3)
    params = init_lmf_params(k_params, input_dims, output_dim, rank)
    features = jax.random.normal(
        k_feat, (batch, sum(input_dims)), dtype=jnp.float32)

    # Tolerance vs the f32 reference: bf16 MXU operands + bf16 output store.
    TOL = dict(atol=2e-2, rtol=2e-2)

    # No-softmax path (module default).
    out = jax.block_until_ready(
        lmf_forward(features, params, input_dims, output_dim, rank, use_softmax=False))
    ref = lmf_reference(features, params, input_dims, output_dim, rank, use_softmax=False)
    assert out.shape == (batch, output_dim)
    assert jnp.allclose(out, ref, **TOL), (out, ref)

    # Softmax path.
    out_sm = jax.block_until_ready(
        lmf_forward(features, params, input_dims, output_dim, rank, use_softmax=True))
    ref_sm = lmf_reference(features, params, input_dims, output_dim, rank, use_softmax=True)
    assert jnp.allclose(out_sm, ref_sm, **TOL), (out_sm, ref_sm)

    # Larger, non-tile-multiple batch: exercises batch padding, the large
    # (up to 1024-row) batch tiles and a multi-step "parallel" grid.
    big_batch = 2500
    big_feats = jax.random.normal(
        k_big, (big_batch, sum(input_dims)), dtype=jnp.float32)
    out_big = jax.block_until_ready(
        lmf_forward(big_feats, params, input_dims, output_dim, rank, use_softmax=False))
    ref_big = lmf_reference(big_feats, params, input_dims, output_dim, rank, use_softmax=False)
    assert out_big.shape == (big_batch, output_dim)
    assert jnp.allclose(out_big, ref_big, **TOL), float(jnp.max(jnp.abs(out_big - ref_big)))

    print("KERNEL_OK")
</pallas_src>

<mosaic_0001>
module attributes {stable_mosaic.version = 11 : i64} {
  func.func @lmf_kernel(%arg0: i32, %arg1: memref<16x37xbf16, #tpu.memory_space<vmem>>, %arg2: memref<37x384xbf16, #tpu.memory_space<vmem>>, %arg3: memref<128x128xf32, #tpu.memory_space<vmem>>, %arg4: memref<1x128xf32, #tpu.memory_space<vmem>>, %arg5: memref<16x128xbf16, #tpu.memory_space<vmem>>) attributes {dimension_semantics = [#tpu.dimension_semantics<parallel>], iteration_bounds = array<i64: 1>, scalar_prefetch = 0 : i64, scratch_operands = 0 : i64, tpu.core_type = #tpu.core_type<tc>, window_params = [{transform_indices = @transform_0, window_bounds = array<i64: 16, 37>}, {pipeline_mode = #tpu.pipeline_mode<synchronous>, transform_indices = @transform_1, window_bounds = array<i64: 37, 384>}, {pipeline_mode = #tpu.pipeline_mode<synchronous>, transform_indices = @transform_2, window_bounds = array<i64: 128, 128>}, {pipeline_mode = #tpu.pipeline_mode<synchronous>, transform_indices = @transform_3, window_bounds = array<i64: 1, 128>}, {transform_indices = @transform_4, window_bounds = array<i64: 16, 128>}]} {
    %c0 = arith.constant 0 : index
    %c0_0 = arith.constant 0 : index
    %0 = vector.load %arg1[%c0, %c0_0] : memref<16x37xbf16, #tpu.memory_space<vmem>>, vector<16x37xbf16>
    %c0_1 = arith.constant 0 : index
    %c0_2 = arith.constant 0 : index
    %1 = vector.load %arg2[%c0_1, %c0_2] : memref<37x384xbf16, #tpu.memory_space<vmem>>, vector<37x384xbf16>
    %cst = arith.constant dense<0.000000e+00> : vector<16x384xf32>
    %2 = tpu.matmul %0, %1, %cst {dimension_numbers = #tpu.dot_dimension_numbers<[1], [0], [0], [1], [0, 0, 1, 1], [], []>} : vector<16x37xbf16>, vector<37x384xbf16>, vector<16x384xf32> -> vector<16x384xf32>
    %3 = vector.extract_strided_slice %2 {offsets = [0, 0], sizes = [16, 128], strides = [1, 1]} : vector<16x384xf32> to vector<16x128xf32>
    %4 = vector.extract_strided_slice %2 {offsets = [0, 128], sizes = [16, 128], strides = [1, 1]} : vector<16x384xf32> to vector<16x128xf32>
    %5 = vector.extract_strided_slice %2 {offsets = [0, 256], sizes = [16, 128], strides = [1, 1]} : vector<16x384xf32> to vector<16x128xf32>
    %6 = arith.mulf %3, %4 : vector<16x128xf32>
    %7 = arith.mulf %6, %5 : vector<16x128xf32>
    %c0_3 = arith.constant 0 : index
    %c0_4 = arith.constant 0 : index
    %8 = vector.load %arg3[%c0_3, %c0_4] : memref<128x128xf32, #tpu.memory_space<vmem>>, vector<128x128xf32>
    %cst_5 = arith.constant dense<0.000000e+00> : vector<16x128xf32>
    %9 = tpu.matmul %7, %8, %cst_5 {dimension_numbers = #tpu.dot_dimension_numbers<[1], [0], [0], [1], [0, 0, 1, 1], [], []>} : vector<16x128xf32>, vector<128x128xf32>, vector<16x128xf32> -> vector<16x128xf32>
    %c0_6 = arith.constant 0 : index
    %c0_7 = arith.constant 0 : index
    %10 = vector.load %arg4[%c0_6, %c0_7] : memref<1x128xf32, #tpu.memory_space<vmem>>, vector<1x128xf32>
    %11 = vector.broadcast %10 : vector<1x128xf32> to vector<16x128xf32>
    %12 = arith.addf %9, %11 : vector<16x128xf32>
    %13 = arith.truncf %12 : vector<16x128xf32> to vector<16x128xbf16>
    %c0_8 = arith.constant 0 : index
    %c0_9 = arith.constant 0 : index
    %14 = vector.load %arg5[%c0_8, %c0_9] : memref<16x128xbf16, #tpu.memory_space<vmem>>, vector<16x128xbf16>
    tpu.vector_store %arg5[%c0_8, %c0_9], %13 {strides = array<i32>} : memref<16x128xbf16, #tpu.memory_space<vmem>>, vector<16x128xbf16>,
    return
  }
  func.func @transform_0(%arg0: i32) -> (i32, i32) {
    %c0_i32 = arith.constant 0 : i32
    %c0_i32_0 = arith.constant 0 : i32
    return %arg0, %c0_i32 : i32, i32
  }
  func.func @transform_1(%arg0: i32) -> (i32, i32) {
    %c0_i32 = arith.constant 0 : i32
    %c0_i32_0 = arith.constant 0 : i32
    %c0_i32_1 = arith.constant 0 : i32
    return %c0_i32, %c0_i32_0 : i32, i32
  }
  func.func @transform_2(%arg0: i32) -> (i32, i32) {
    %c0_i32 = arith.constant 0 : i32
    %c0_i32_0 = arith.constant 0 : i32
    %c0_i32_1 = arith.constant 0 : i32
    return %c0_i32, %c0_i32_0 : i32, i32
  }
  func.func @transform_3(%arg0: i32) -> (i32, i32) {
    %c0_i32 = arith.constant 0 : i32
    %c0_i32_0 = arith.constant 0 : i32
    %c0_i32_1 = arith.constant 0 : i32
    return %c0_i32, %c0_i32_0 : i32, i32
  }
  func.func @transform_4(%arg0: i32) -> (i32, i32) {
    %c0_i32 = arith.constant 0 : i32
    %c0_i32_0 = arith.constant 0 : i32
    return %arg0, %c0_i32 : i32, i32
  }
}

</mosaic_0001>

<bundles_post_ra>
// kernel: tpu_custom_call.1
= control target key start
LH: loop header
LB: loop body
LE: loop exit
PB: predicated region body
PF: predicated region fallthrough
CT: control target
= control target key end

     0   :  { %9 = vsyncpa [#allocation3], 0  ;;  %s687_s0 = inlined_call_operand.hbm [shape: bf16[16,37], index: 0, kind: input, shape index: {}]   ;;  %s688_s1 = inlined_call_operand.hbm [shape: bf16[37,384], index: 1, kind: input, shape index: {}]   ;;  %s689_s2 = inlined_call_operand.hbm [shape: f32[128,128], index: 2, kind: input, shape index: {}]   ;;  %s690_s3 = inlined_call_operand.vmem [shape: f32[1,128], index: 3, kind: input, shape index: {}]   ;;  %s691_s4 = inlined_call_operand.hbm [shape: bf16[16,128], index: 4, kind: output, shape index: {}]  }
   0x1   :  { %10 = vsyncpa [#allocation6], 0 }
   0x2   :  { %11 = vsyncpa [#allocation4], 0  ;;  %s589_s15 = smov [#allocation5]   ;;  %s495_s19 = scalar_lea.hbm %s688_s1, 960 }
   0x3   :  { %s29_s16 = sshll.u32 %s589_s15, 4  ;;  %p496_p0 = scmp.ne.s32.totalorder %s688_s1, %s495_s19  ;;  %s30_s16 = int_to_ptr.vmem [resolvable:$true] %s29_s16 }
   0x4   :  { %p499_p1 = scmp.lt.u32.totalorder %s495_s19, %s688_s1 }
   0x6   :  { %p501_p2 = pnand %p499_p1, %p496_p0 }
   0x8   :  { %504 = shalt.err (!%p501_p2)
}
   0x9   :  { %s505_s24 = scalar_lea.vmem %s30_s16, 960  ;;  %p510_p4 = scmp.lt.s32.totalorder %s30_s16, %s30_s16 }
   0xa   :  { %p506_p3 = scmp.ne.s32.totalorder %s30_s16, %s505_s24  ;;  %p511_p5 = scmp.lt.s32.totalorder %s505_s24, %s505_s24 }
   0xc   :  { %p512_p6 = por %p511_p5, %p510_p4 }
   0xe   :  { %p513_p7 = pnand %p512_p6, %p506_p3 }
  0x10   :  { %516 = shalt.err (!%p513_p7)
}
  0x11   :  { %s590_s25 = smov 192   ;;  %s591_s26 = smov 12  }
  0x12   :  { %35 = dma.hbm_to_vmem [thread:$0]  %s688_s1, 960, %s30_s16, [#allocation6], %s590_s25, %s590_s25, %s591_s26  }
  0x13   :  { %s592_s29 = smov [#allocation2]   ;;  %s517_s7 = scalar_lea.hbm %s687_s0, 128 }
  0x14   :  { %s17_s30 = sshll.u32 %s592_s29, 4  ;;  %p518_p8 = scmp.ne.s32.totalorder %s687_s0, %s517_s7  ;;  %s18_s30 = int_to_ptr.vmem [resolvable:$true] %s17_s30 }
  0x15   :  { %p521_p9 = scmp.lt.u32.totalorder %s517_s7, %s687_s0 }
  0x17   :  { %p523_p10 = pnand %p521_p9, %p518_p8 }
  0x19   :  { %526 = shalt.err (!%p523_p10)
}
  0x1a   :  { %s527_s12 = scalar_lea.vmem %s18_s30, 128  ;;  %p532_p12 = scmp.lt.s32.totalorder %s18_s30, %s18_s30 }
  0x1b   :  { %p528_p11 = scmp.ne.s32.totalorder %s18_s30, %s527_s12  ;;  %p533_p13 = scmp.lt.s32.totalorder %s527_s12, %s527_s12 }
  0x1d   :  { %p534_p0 = por %p533_p13, %p532_p12 }
  0x1f   :  { %p535_p1 = pnand %p534_p0, %p528_p11 }
  0x21   :  { %538 = shalt.err (!%p535_p1)
}
  0x22   :  { %s593_s1 = smov 64   ;;  %s594_s13 = smov 4  }
  0x23   :  { %23 = dma.hbm_to_vmem [thread:$0]  %s687_s0, 128, %s18_s30, [#allocation3], %s593_s1, %s593_s1, %s594_s13  }
  0x24   :  { %s595_s16 = smov [#allocation7]   ;;  %s539_s20 = scalar_lea.hbm %s689_s2, 2048 }
  0x25   :  { %s41_s17 = sshll.u32 %s595_s16, 4  ;;  %p540_p2 = scmp.ne.s32.totalorder %s689_s2, %s539_s20  ;;  %s42_s17 = int_to_ptr.vmem [resolvable:$true] %s41_s17 }
  0x26   :  { %p543_p3 = scmp.lt.u32.totalorder %s539_s20, %s689_s2 }
  0x28   :  { %p545_p4 = pnand %p543_p3, %p540_p2 }
  0x2a   :  { %548 = shalt.err (!%p545_p4)
}
  0x2b   :  { %s549_s25 = scalar_lea.vmem %s42_s17, 2048  ;;  %p554_p6 = scmp.lt.s32.totalorder %s42_s17, %s42_s17 }
  0x2c   :  { %p550_p5 = scmp.ne.s32.totalorder %s42_s17, %s549_s25  ;;  %p555_p7 = scmp.lt.s32.totalorder %s549_s25, %s549_s25 }
  0x2e   :  { %p556_p8 = por %p555_p7, %p554_p6 }
  0x30   :  { %p557_p9 = pnand %p556_p8, %p550_p5 }
  0x32   :  { %560 = shalt.err (!%p557_p9)
}
  0x33   :  { %s596_s0 = smov 128   ;;  %s597_s26 = smov 8  }
  0x34   :  { %47 = dma.hbm_to_vmem [thread:$0]  %s689_s2, 2048, %s42_s17, [#allocation6], %s596_s0, %s596_s0, %s597_s26  }
  0x35   :  { %583 = dma.done.wait [#allocation3], 128  }
  0x36   :  { %584 = vsyncadd [#allocation3], 4294967168 }
  0x37   :  { %585 = dma.done.wait [#allocation6], 3008  }
  0x38   :  { %586 = vsyncadd [#allocation6], 4294964288  ;;  %v598_v0 = vmov 0   ;;  %vm121_vm0 = vcmask 1041408   ;;  %vm122_vm1 = vcmask 1042432   ;;  %v599_v1 = vmov 65535  }
  0x39   :  { %166 = vmatprep.mubr.bf16.mxu1 %v598_v0  ;;  %v123_v2 = vsel %vm121_vm0, 4294967295, %v599_v1  ;;  %v483_v3 = vld [vmem:[#allocation5 + $0x4] ss:$12 sps:$4 sm:$0xff]   ;;  %v485_v4 = vld [vmem:[#allocation5] ss:$12 sps:$4 sm:$0xff]   ;;  %v225_v16 = vld [vmem:[#allocation7 + $0x18] sm:$0xff] }
  0x3a   :  { %134 = vmatprep.subr.bf16.mxu1 %v483_v3  ;;  %v486_v5 = vld [vmem:[#allocation5 + $0x1c] ss:$12 sps:$4 sm:$0xff]   ;;  %v70_v6 = vld [vmem:[#allocation5 + $0x30] sm:$0x77]  ;;  %v124_v7 = vsel %vm122_vm1, %v123_v2, 0  ;;  %vm117_vm2 = vcmask 302080  }
  0x3b   :  { %135 = vmatpush1.bf16.msra.mxu1 %v485_v4  ;;  %v488_v8 = vld [vmem:[#allocation5 + $0x18] ss:$12 sps:$4 sm:$0xff]   ;;  %v356_v9 = vcombine.high %v70_v6, %v70_v6  ;;  %v355_v10 = vcombine.low %v70_v6, %v70_v6  ;;  %v222_v12 = vld [vmem:[#allocation7] sm:$0xff]  ;;  %v224_v15 = vld [vmem:[#allocation7 + $0x10] sm:$0xff]  ;;  %v600_v23 = vmov 0.0   ;;  %vm601_vm3 = vmmov 0  }
  0x3c   :  { %136 = vmatprep.subr.bf16.mxu1 %v486_v5  ;;  %v223_v14 = vld [vmem:[#allocation7 + $0x8] sm:$0xff]  ;;  %v441_v18 = vpack.c.bf16 %v225_v16, %v224_v15  ;;  %v491_v19 = vld [vmem:[#allocation2] sm:$0xff]   ;;  %v228_v25 = vld [vmem:[#allocation7 + $0x30] sm:$0xff]  ;;  %s602_s30 = smov [#allocation8]  }
  0x3d   :  { %v129_v11 = vand.u32 %v356_v9, %v124_v7  ;;  %v126_v13 = vand.u32 %v355_v10, %v124_v7  ;;  %v437_v17 = vpack.c.bf16 %v223_v14, %v222_v12  ;;  %v226_v20 = vld [vmem:[#allocation7 + $0x20] sm:$0xff]  ;;  %v227_v21 = vld [vmem:[#allocation7 + $0x28] sm:$0xff]  ;;  %v229_v26 = vld [vmem:[#allocation7 + $0x38] sm:$0xff]  ;;  %s335_s5 = sshll.u32 %s602_s30, 4  ;;  %s336_s5 = int_to_ptr.vmem [resolvable:$true] %s335_s5 }
  0x3e   :  { %v492_v22 = vld [vmem:[#allocation5 + $0x8] ss:$12 sps:$4 sm:$0xff]   ;;  %v445_v24 = vpack.c.bf16 %v227_v21, %v226_v20  ;;  %v493_v27 = vld [vmem:[#allocation5 + $0x20] ss:$12 sps:$4 sm:$0xff]   ;;  %v449_v29 = vpack.c.bf16 %v229_v26, %v228_v25  ;;  %v360_v55 = vld [vmem:[%s690_s3] ss:$0 sm:$0xff]  ;;  %p566_p11 = scmp.lt.s32.totalorder %s336_s5, %s336_s5 }
  0x3f   :  { %137 = vmatpush1.bf16.msra.mxu1 %v488_v8  ;;  %438 = vmatprep.subr.bf16.mxu0 %v437_v17  ;;  %v494_v28 = vld [vmem:[#allocation5 + $0x38] ss:$0 sps:$4 sm:$0x77]   ;;  %v230_v31 = vld [vmem:[#allocation7 + $0x40] sm:$0xff]  ;;  %v231_v32 = vld [vmem:[#allocation7 + $0x48] sm:$0xff]  ;;  %s561_s6 = scalar_lea.vmem %s336_s5, 128 }
  0x40   :  { %138 = vmatprep.subr.bf16.mxu1 %v129_v11  ;;  %440 = vmatpush3.bf16.msra.mxu0 %v437_v17  ;;  %v132_v30 = vand.u32 %v494_v28, %v124_v7  ;;  %v453_v33 = vpack.c.bf16 %v231_v32, %v230_v31  ;;  %v232_v34 = vld [vmem:[#allocation7 + $0x50] sm:$0xff]  ;;  %v233_v35 = vld [vmem:[#allocation7 + $0x58] sm:$0xff]  ;;  %v234_v37 = vld [vmem:[#allocation7 + $0x60] sm:$0xff]  ;;  %p562_p10 = scmp.ne.s32.totalorder %s336_s5, %s561_s6  ;;  %p567_p12 = scmp.lt.s32.totalorder %s561_s6, %s561_s6 }
  0x41   :  { %442 = vmatprep.subr.bf16.mxu0 %v441_v18  ;;  %v457_v36 = vpack.c.bf16 %v233_v35, %v232_v34  ;;  %v235_v38 = vld [vmem:[#allocation7 + $0x68] sm:$0xff]  ;;  %v236_v40 = vld [vmem:[#allocation7 + $0x70] sm:$0xff]  ;;  %v237_v41 = vld [vmem:[#allocation7 + $0x78] sm:$0xff] }
  0x42   :  { %v461_v39 = vpack.c.bf16 %v235_v38, %v234_v37  ;;  %v465_v42 = vpack.c.bf16 %v237_v41, %v236_v40  ;;  %p568_p13 = por %p567_p12, %p566_p11 }
  0x43   :  { %139 = vmatpush1.bf16.msra.mxu1 %v126_v13 }
  0x44   :  { %392 = vmatprep.subr.bf16.mxu1 %v600_v23  ;;  %444 = vmatpush3.bf16.msra.mxu0 %v441_v18  ;;  %p569_p0 = pnand %p568_p13, %p562_p10 }
  0x45   :  { %446 = vmatprep.subr.bf16.mxu0 %v445_v24 }
  0x46   :  { %358 = vmatmul.mubr.msk.bf16.vlgmr.msra.gmra.mrb[0].mxu1 %vm117_vm2, %v491_v19 }
  0x47   :  { %393 = vmatpush3.bf16.msra.mxu1 %v492_v22  ;;  %398 = vmatprep.mubr.msk.bf16.mxu1 %vm601_vm3, %v600_v23 }
  0x48   :  { %394 = vmatprep.subr.bf16.mxu1 %v600_v23  ;;  %448 = vmatpush3.bf16.msra.mxu0 %v445_v24 }
  0x49   :  { %450 = vmatprep.subr.bf16.mxu0 %v449_v29 }
  0x4b   :  { %395 = vmatpush3.bf16.msra.mxu1 %v493_v27 }
  0x4c   :  { %396 = vmatprep.subr.bf16.mxu1 %v600_v23  ;;  %452 = vmatpush3.bf16.msra.mxu0 %v449_v29 }
  0x4d   :  { %454 = vmatprep.subr.bf16.mxu0 %v453_v33 }
  0x4f   :  { %397 = vmatpush3.bf16.msra.mxu1 %v132_v30 }
  0x50   :  { %456 = vmatpush3.bf16.msra.mxu0 %v453_v33 }
  0x51   :  { %458 = vmatprep.subr.bf16.mxu0 %v457_v36 }
  0x52   :  { %399 = vmatmul.mubr.msk.bf16.vlgmr.msra.gmra.mrb[4].mxu1 %vm117_vm2, %v491_v19 }
  0x54   :  { %460 = vmatpush3.bf16.msra.mxu0 %v457_v36 }
  0x55   :  { %462 = vmatprep.subr.bf16.mxu0 %v461_v39 }
  0x58   :  { %464 = vmatpush3.bf16.msra.mxu0 %v461_v39 }
  0x59   :  { %466 = vmatprep.subr.bf16.mxu0 %v465_v42 }
  0x5c   :  { %468 = vmatpush3.bf16.msra.mxu0 %v465_v42 }
 0x119   :  { %v168_v43 = vpop.f32.mrb[0].mxu1 }
 0x11a   :  { %v170_v44 = vpop.f32.mrb[1].mxu1 }
 0x11b   :  { %v218_v45 = vmul.f32 %v170_v44, %v168_v43  ;;  %v172_v46 = vpop.f32.mrb[2].mxu1 }
 0x11c   :  { %v174_v47 = vpop.f32.mrb[3].mxu1 }
 0x11d   :  { %v219_v48 = vmul.f32 %v174_v47, %v172_v46 }
 0x125   :  { %v211_v49 = vpop.f32.mrb[4].mxu1 }
 0x126   :  { %v400_v50 = vpop.f32.mrb[5].mxu1  ;;  %v220_v51 = vmul.f32 %v218_v45, %v211_v49 }
 0x127   :  { %v214_v52 = vpop.f32.mrb[6].mxu1 }
 0x128   :  { %v221_v53 = vmul.f32 %v219_v48, %v214_v52  ;;  %v401_v54 = vpop.f32.mrb[7].mxu1  ;;  %434 = vmatprep.mubr.f32.mxu0 %v220_v51 }
 0x12a   :  { %435 = vmatmul.mubr.f32.vlgmr.msra.gmra.mrb[0].mxu0 %v221_v53 }
 0x1fd   :  { %v436_v56 = vpop.f32.mrb[0].mxu0 }
 0x1fe   :  { %v317_v57 = vadd.f32 %v436_v56, %v360_v55  ;;  %v311_v58 = vpop.f32.mrb[1].mxu0 }
 0x1ff   :  { %v312_v59 = vadd.f32 %v360_v55, %v311_v58 }
 0x201   :  { %v368_v60 = vpack.c.bf16 %v317_v57, %v312_v59 }
 0x203   :  { %369 = vst [vmem:[#allocation8] sm:$0xff] %v368_v60  }
 0x204   :  { %572 = shalt.err (!%p569_p0)
}
 0x205   :  { %s573_s3 = scalar_lea.hbm %s691_s4, 128 }
 0x206   :  { %p574_p1 = scmp.ne.s32.totalorder %s691_s4, %s573_s3  ;;  %p577_p2 = scmp.lt.u32.totalorder %s573_s3, %s691_s4 }
 0x208   :  { %p579_p3 = pnand %p577_p2, %p574_p1 }
 0x20a   :  { %582 = shalt.err (!%p579_p3)
}
 0x20b   :  { %341 = dma.vmem_to_hbm [thread:$0]  %s336_s5, 128, %s691_s4, [#allocation4], %s593_s1, %s593_s1, %s594_s13  }
 0x20c   :  { %587 = dma.done.wait [#allocation4], 128  }
 0x20d   :  { %588 = vsyncadd [#allocation4], 4294967168 }
 0x20e   :  { %345 = vsyncpa [#allocation3], 1 }
 0x20f   :  { %346 = vsyncpa [#allocation6], 1 }
 0x210   :  { %347 = vsyncpa [#allocation4], 1 }

</bundles_post_ra>
